<compile_context>
chip_gen: v6e
topology: v6e:2x2x1
jax: 0.10.0
libtpu: 0.0.40
codegen_flags: <defaults>
</compile_context>

<pallas_src>
import functools

import jax
import jax.numpy as jnp
import numpy as np
from jax.experimental import pallas as pl
from jax.experimental.pallas import tpu as pltpu


def _build_selection_matrix(h, w, k, dtype):
    """(k*H*W, k*Ho*Wo) 0/1 block-diagonal matrix implementing x[..., ::2, ::2].

    Within a k-channel group, input channel p (lanes [p*H*W, (p+1)*H*W)) maps to
    output channel p (lanes [p*Ho*Wo, (p+1)*Ho*Wo)); inside one block, flat
    output index (i*Wo + j) selects flat input index (2*i*W + 2*j).
    Exactly one 1.0 per output column -> the matmul is an exact copy.
    """
    ho, wo = h // 2, w // 2
    base = np.zeros((h * w, ho * wo), dtype=np.float32)
    ii, jj = np.meshgrid(np.arange(ho), np.arange(wo), indexing="ij")
    in_flat = (2 * ii) * w + 2 * jj          # even rows / even cols
    out_flat = ii * wo + jj
    base[in_flat.ravel(), out_flat.ravel()] = 1.0
    sel = np.kron(np.eye(k, dtype=np.float32), base)   # block-diagonal
    return jnp.asarray(sel, dtype=dtype)


def _shortcut_kernel(x_ref, sel_ref, o_ref, *, c_groups, pad_groups):
    # x_ref:   (B, C//k,      k*H*W)    lane-dense grouped input block
    # sel_ref: (k*H*W, k*Ho*Wo)         VMEM-resident 0/1 selection matrix
    # o_ref:   (B, C_out//k,  k*Ho*Wo)
    b_tile = x_ref.shape[0]
    khowo = o_ref.shape[-1]

    # Zero-fill only the two channel-pad slabs (live channels written once below).
    if pad_groups:
        zeros = jnp.zeros((b_tile, pad_groups, khowo), dtype=o_ref.dtype)
        o_ref[:, :pad_groups, :] = zeros
        o_ref[:, pad_groups + c_groups:, :] = zeros

    sel = sel_ref[...]
    # One (C//k, k*H*W) x (k*H*W, k*Ho*Wo) MXU matmul per image performs the
    # full 2x2 spatial subsample for k channels at a time (exact: one-hot
    # columns, f32 accumulation).  Leading-dim ref indexing with a static
    # unrolled loop -> no in-kernel reshape/relayout needed.
    for b in range(b_tile):
        d = jnp.dot(x_ref[b], sel, preferred_element_type=jnp.float32)
        o_ref[b, pad_groups:pad_groups + c_groups, :] = d.astype(o_ref.dtype)


def _pick_channel_group(howo, c, pad):
    """Channels grouped per matmul so the output last dim fills 128 lanes."""
    if howo >= 128:
        return 1
    target = max(1, 128 // howo)
    for cand in range(min(target, c), 0, -1):
        if c % cand == 0 and pad % cand == 0:
            return cand
    return 1


def _pick_batch_tile(n, per_image_bytes, fixed_bytes,
                     budget_bytes=12 << 20, max_tile=32):
    """Largest batch tile whose blocks + resident operand fit the VMEM budget."""
    avail = max(per_image_bytes, budget_bytes - fixed_bytes)
    cap = min(n, max_tile, max(1, avail // max(1, per_image_bytes)))
    best = 1
    for d in range(1, cap + 1):
        if n % d == 0:
            best = d
    # Awkward (e.g. prime) batch sizes: pad the batch up to a multiple of the
    # cap-sized tile rather than degrading to tiny overhead-dominated steps.
    if best * 2 <= cap:
        best = cap
    return best


def lambda_layer(x, planes):
    """Pallas implementation of the BBN LambdaLayer shortcut (option A)."""
    n, c, h, w = x.shape
    assert h % 2 == 0 and w % 2 == 0, "even spatial dims assumed (as in BBN/CIFAR)"
    pad = planes // 4
    ho, wo = h // 2, w // 2
    c_out = c + 2 * pad
    hw, howo = h * w, ho * wo

    # Group k channels per matmul so the output block's last dim is a full
    # 128-lane slab whenever possible (unmasked stores, filled MXU N).
    k = _pick_channel_group(howo, c, pad)
    cg, cog, padg = c // k, c_out // k, pad // k

    # Free contiguous metadata reshape: spatial flattened onto the lane axis,
    # k channels fused per group row.
    x_grp = x.reshape(n, cg, k * hw)

    # Selection matrix built once wrapper-side; exact even in bf16 (one-hot).
    sel = _build_selection_matrix(h, w, k, x.dtype)

    itemsize = jnp.dtype(x.dtype).itemsize
    per_image = (c * hw * itemsize * 2            # input block, double-buffered
                 + c_out * howo * itemsize * 2)   # output block, double-buffered
    fixed = sel.size * itemsize * 3               # resident sel (+ value copy)
    b_tile = _pick_batch_tile(n, per_image, fixed)

    n_pad = pl.cdiv(n, b_tile) * b_tile
    if n_pad != n:
        x_grp = jnp.pad(x_grp, ((0, n_pad - n), (0, 0), (0, 0)))

    kernel = functools.partial(_shortcut_kernel, c_groups=cg, pad_groups=padg)

    out_grp = pl.pallas_call(
        kernel,
        out_shape=jax.ShapeDtypeStruct((n_pad, cog, k * howo), x.dtype),
        grid=(n_pad // b_tile,),
        in_specs=[
            pl.BlockSpec((b_tile, cg, k * hw), lambda i: (i, 0, 0)),
            pl.BlockSpec((k * hw, k * howo), lambda i: (0, 0)),   # fetched once
        ],
        out_specs=pl.BlockSpec((b_tile, cog, k * howo), lambda i: (i, 0, 0)),
        compiler_params=pltpu.CompilerParams(
            dimension_semantics=("parallel",),
            vmem_limit_bytes=32 << 20,
        ),
    )(x_grp, sel)

    return out_grp[:n].reshape(n, c_out, ho, wo)


if __name__ == "__main__":
    key = jax.random.PRNGKey(0)
    N, C, H, W = 2, 4, 16, 16
    planes = 8                       # BBN shortcut: pad planes//4 channels per side
    x = jax.random.normal(key, (N, C, H, W), dtype=jnp.float32)

    out = jax.block_until_ready(lambda_layer(x, planes))

    # Pure-JAX reference of the PyTorch lambda:
    #   F.pad(x[:, :, ::2, ::2], (0,0, 0,0, planes//4, planes//4))
    pad = planes // 4
    ref = jnp.pad(x[:, :, ::2, ::2], ((0, 0), (pad, pad), (0, 0), (0, 0)))

    assert out.shape == ref.shape and out.dtype == ref.dtype
    np.testing.assert_allclose(np.asarray(out), np.asarray(ref), rtol=0, atol=0)
    print("KERNEL_OK")
</pallas_src>

<mosaic_0001>
module attributes {stable_mosaic.version = 11 : i64} {
  func.func @_shortcut_kernel(%arg0: i32, %arg1: memref<2x2x512xf32, #tpu.memory_space<vmem>>, %arg2: memref<512x128xf32, #tpu.memory_space<vmem>>, %arg3: memref<2x4x128xf32, #tpu.memory_space<vmem>>) attributes {dimension_semantics = [#tpu.dimension_semantics<parallel>], iteration_bounds = array<i64: 1>, scalar_prefetch = 0 : i64, scratch_operands = 0 : i64, tpu.core_type = #tpu.core_type<tc>, window_params = [{transform_indices = @transform_0, window_bounds = array<i64: 2, 2, 512>}, {pipeline_mode = #tpu.pipeline_mode<synchronous>, transform_indices = @transform_1, window_bounds = array<i64: 512, 128>}, {transform_indices = @transform_2, window_bounds = array<i64: 2, 4, 128>}]} {
    %cst = arith.constant 0.000000e+00 : f32
    %0 = vector.broadcast %cst : f32 to vector<2x1x128xf32>
    %c0 = arith.constant 0 : index
    %c0_0 = arith.constant 0 : index
    %c0_1 = arith.constant 0 : index
    %1 = vector.load %arg3[%c0, %c0_0, %c0_1] : memref<2x4x128xf32, #tpu.memory_space<vmem>>, vector<2x1x128xf32>
    tpu.vector_store %arg3[%c0, %c0_0, %c0_1], %0 {strides = array<i32>} : memref<2x4x128xf32, #tpu.memory_space<vmem>>, vector<2x1x128xf32>,
    %c0_2 = arith.constant 0 : index
    %c3 = arith.constant 3 : index
    %c0_3 = arith.constant 0 : index
    %2 = vector.load %arg3[%c0_2, %c3, %c0_3] : memref<2x4x128xf32, #tpu.memory_space<vmem>>, vector<2x1x128xf32>
    tpu.vector_store %arg3[%c0_2, %c3, %c0_3], %0 {strides = array<i32>} : memref<2x4x128xf32, #tpu.memory_space<vmem>>, vector<2x1x128xf32>,
    %c0_4 = arith.constant 0 : index
    %c0_5 = arith.constant 0 : index
    %3 = vector.load %arg2[%c0_4, %c0_5] : memref<512x128xf32, #tpu.memory_space<vmem>>, vector<512x128xf32>
    %c0_6 = arith.constant 0 : index
    %c0_7 = arith.constant 0 : index
    %c0_8 = arith.constant 0 : index
    %4 = vector.load %arg1[%c0_6, %c0_7, %c0_8] : memref<2x2x512xf32, #tpu.memory_space<vmem>>, vector<1x2x512xf32>
    %5 = vector.shape_cast %4 : vector<1x2x512xf32> to vector<2x512xf32>
    %cst_9 = arith.constant dense<0.000000e+00> : vector<2x128xf32>
    %6 = tpu.matmul %5, %3, %cst_9 {dimension_numbers = #tpu.dot_dimension_numbers<[1], [0], [0], [1], [0, 0, 1, 1], [], []>} : vector<2x512xf32>, vector<512x128xf32>, vector<2x128xf32> -> vector<2x128xf32>
    %c0_10 = arith.constant 0 : index
    %c1 = arith.constant 1 : index
    %c0_11 = arith.constant 0 : index
    %7 = vector.load %arg3[%c0_10, %c1, %c0_11] : memref<2x4x128xf32, #tpu.memory_space<vmem>>, vector<1x2x128xf32>
    %8 = vector.shape_cast %7 : vector<1x2x128xf32> to vector<2x128xf32>
    %9 = vector.shape_cast %6 : vector<2x128xf32> to vector<1x2x128xf32>
    tpu.vector_store %arg3[%c0_10, %c1, %c0_11], %9 {strides = array<i32>} : memref<2x4x128xf32, #tpu.memory_space<vmem>>, vector<1x2x128xf32>,
    %c1_12 = arith.constant 1 : index
    %c0_13 = arith.constant 0 : index
    %c0_14 = arith.constant 0 : index
    %10 = vector.load %arg1[%c1_12, %c0_13, %c0_14] : memref<2x2x512xf32, #tpu.memory_space<vmem>>, vector<1x2x512xf32>
    %11 = vector.shape_cast %10 : vector<1x2x512xf32> to vector<2x512xf32>
    %cst_15 = arith.constant dense<0.000000e+00> : vector<2x128xf32>
    %12 = tpu.matmul %11, %3, %cst_15 {dimension_numbers = #tpu.dot_dimension_numbers<[1], [0], [0], [1], [0, 0, 1, 1], [], []>} : vector<2x512xf32>, vector<512x128xf32>, vector<2x128xf32> -> vector<2x128xf32>
    %c1_16 = arith.constant 1 : index
    %c1_17 = arith.constant 1 : index
    %c0_18 = arith.constant 0 : index
    %13 = vector.load %arg3[%c1_16, %c1_17, %c0_18] : memref<2x4x128xf32, #tpu.memory_space<vmem>>, vector<1x2x128xf32>
    %14 = vector.shape_cast %13 : vector<1x2x128xf32> to vector<2x128xf32>
    %15 = vector.shape_cast %12 : vector<2x128xf32> to vector<1x2x128xf32>
    tpu.vector_store %arg3[%c1_16, %c1_17, %c0_18], %15 {strides = array<i32>} : memref<2x4x128xf32, #tpu.memory_space<vmem>>, vector<1x2x128xf32>,
    return
  }
  func.func @transform_0(%arg0: i32) -> (i32, i32, i32) {
    %c0_i32 = arith.constant 0 : i32
    %c0_i32_0 = arith.constant 0 : i32
    %c0_i32_1 = arith.constant 0 : i32
    return %arg0, %c0_i32, %c0_i32_0 : i32, i32, i32
  }
  func.func @transform_1(%arg0: i32) -> (i32, i32) {
    %c0_i32 = arith.constant 0 : i32
    %c0_i32_0 = arith.constant 0 : i32
    %c0_i32_1 = arith.constant 0 : i32
    return %c0_i32, %c0_i32_0 : i32, i32
  }
  func.func @transform_2(%arg0: i32) -> (i32, i32, i32) {
    %c0_i32 = arith.constant 0 : i32
    %c0_i32_0 = arith.constant 0 : i32
    %c0_i32_1 = arith.constant 0 : i32
    return %arg0, %c0_i32, %c0_i32_0 : i32, i32, i32
  }
}

</mosaic_0001>

<bundles_post_ra>
// kernel: tpu_custom_call.1
= control target key start
LH: loop header
LB: loop body
LE: loop exit
PB: predicated region body
PF: predicated region fallthrough
CT: control target
= control target key end

     0   :  { %7 = vsyncpa [#allocation3], 0  ;;  %s968_s0 = inlined_call_operand.hbm [shape: f32[2,2,512], index: 0, kind: input, shape index: {}]   ;;  %s969_s1 = inlined_call_operand.hbm [shape: f32[512,128], index: 1, kind: input, shape index: {}]   ;;  %s970_s2 = inlined_call_operand.hbm [shape: f32[2,4,128], index: 2, kind: output, shape index: {}]  }
   0x1   :  { %8 = vsyncpa [#allocation6], 0 }
   0x2   :  { %9 = vsyncpa [#allocation4], 0  ;;  %s673_s9 = smov [#allocation2]  }
   0x3   :  { %s15_s10 = sshll.u32 %s673_s9, 4  ;;  %s16_s10 = int_to_ptr.vmem [resolvable:$true] %s15_s10 }
   0x4   :  { %s615_s11 = scalar_lea.vmem %s16_s10, 256  ;;  %p620_p1 = scmp.lt.s32.totalorder %s16_s10, %s16_s10 }
   0x5   :  { %p616_p0 = scmp.ne.s32.totalorder %s16_s10, %s615_s11  ;;  %p621_p2 = scmp.lt.s32.totalorder %s615_s11, %s615_s11 }
   0x7   :  { %p622_p3 = por %p621_p2, %p620_p1 }
   0x9   :  { %p623_p4 = pnand %p622_p3, %p616_p0 }
   0xb   :  { %626 = shalt.err (!%p623_p4)
}
   0xc   :  { %s674_s12 = smov 128   ;;  %s675_s13 = smov 8  }
   0xd   :  { %21 = dma.hbm_to_vmem [thread:$0]  %s968_s0, 256, %s16_s10, [#allocation3], %s674_s12, %s674_s12, %s675_s13  }
   0xe   :  { %s676_s16 = smov [#allocation5]  }
   0xf   :  { %s27_s17 = sshll.u32 %s676_s16, 4  ;;  %s28_s17 = int_to_ptr.vmem [resolvable:$true] %s27_s17 }
  0x10   :  { %s635_s18 = scalar_lea.vmem %s28_s17, 8192  ;;  %p640_p6 = scmp.lt.s32.totalorder %s28_s17, %s28_s17 }
  0x11   :  { %p636_p5 = scmp.ne.s32.totalorder %s28_s17, %s635_s18  ;;  %p641_p7 = scmp.lt.s32.totalorder %s635_s18, %s635_s18 }
  0x13   :  { %p642_p8 = por %p641_p7, %p640_p6 }
  0x15   :  { %p643_p9 = pnand %p642_p8, %p636_p5 }
  0x17   :  { %646 = shalt.err (!%p643_p9)
}
  0x18   :  { %33 = dma.hbm_to_vmem [thread:$0]  %s969_s1, 8192, %s28_s17, [#allocation6], %s674_s12, %s674_s12, %s675_s13  }
  0x19   :  { %667 = dma.done.wait [#allocation3], 256  }
  0x1a   :  { %668 = vsyncadd [#allocation3], 4294967040 }
  0x1b   :  { %669 = dma.done.wait [#allocation6], 8192  }
  0x1c   :  { %670 = vsyncadd [#allocation6], 4294959104  ;;  %v703_v0 = vld [vmem:[#allocation5 + $0xf8] sm:$0xff]  ;;  %v713_v4 = vld [vmem:[#allocation5 + $0xf0] sm:$0xff]  ;;  %v677_v30 = vmov 1983009808   ;;  %v114_v32 = vlaneseq }
  0x1d   :  { %v705_v1 = vld [vmem:[#allocation5 + $0x1f8] sm:$0xff]  ;;  %456 = vmatprep.subr.mxu0 %v703_v0  ;;  %v715_v5 = vld [vmem:[#allocation5 + $0x1f0] sm:$0xff]  ;;  %v723_v8 = vld [vmem:[#allocation5 + $0xe8] sm:$0xff]  ;;  %v112_v31 = vunpack.c.l.s4 %v677_v30  ;;  %s679_s0 = smov [#allocation7]  }
  0x1e   :  { %v707_v2 = vld [vmem:[#allocation5 + $0x78] sm:$0xff]  ;;  %491 = vmatprep.subr.mxu1 %v705_v1  ;;  %v719_v6 = vld [vmem:[#allocation5 + $0x70] sm:$0xff]  ;;  %v727_v9 = vld [vmem:[#allocation5 + $0x1e8] sm:$0xff]  ;;  %v115_v42 = vshrl.u32 %v114_v32, 7  ;;  %s443_s1 = sshll.u32 %s679_s0, 4  ;;  %s444_s1 = int_to_ptr.vmem [resolvable:$true] %s443_s1 }
  0x1f   :  { %v711_v3 = vld [vmem:[#allocation5 + $0x178] sm:$0xff]  ;;  %457 = vmatpush3.msra.mxu0 %v707_v2  ;;  %v721_v7 = vld [vmem:[#allocation5 + $0x170] sm:$0xff]  ;;  %v729_v10 = vld [vmem:[#allocation5 + $0x68] sm:$0xff]  ;;  %v113_v41 = vunpack.c.0.s8 %v112_v31  ;;  %s647_s21 = scalar_lea.vmem %s444_s1, 128  ;;  %p652_p11 = scmp.lt.s32.totalorder %s444_s1, %s444_s1 }
  0x20   :  { %492 = vmatpush3.msra.mxu1 %v711_v3  ;;  %458 = vmatprep.subr.mxu0 %v713_v4  ;;  %v731_v11 = vld [vmem:[#allocation5 + $0x168] sm:$0xff]  ;;  %v735_v12 = vld [vmem:[#allocation5 + $0xe0] sm:$0xff]  ;;  %v747_v16 = vld [vmem:[#allocation5 + $0xd8] sm:$0xff]  ;;  %p648_p10 = scmp.ne.s32.totalorder %s444_s1, %s647_s21  ;;  %p653_p12 = scmp.lt.s32.totalorder %s647_s21, %s647_s21 }
  0x21   :  { %493 = vmatprep.subr.mxu1 %v715_v5  ;;  %459 = vmatpush3.msra.mxu0 %v719_v6  ;;  %v737_v13 = vld [vmem:[#allocation5 + $0x1e0] sm:$0xff]  ;;  %v749_v17 = vld [vmem:[#allocation5 + $0x1d8] sm:$0xff]  ;;  %v759_v20 = vld [vmem:[#allocation5 + $0xd0] sm:$0xff]  ;;  %v835_v51 = vsub.s32 %v113_v41, %v115_v42 }
  0x22   :  { %494 = vmatpush3.msra.mxu1 %v721_v7  ;;  %460 = vmatprep.subr.mxu0 %v723_v8  ;;  %v741_v14 = vld [vmem:[#allocation5 + $0x60] sm:$0xff]  ;;  %v753_v18 = vld [vmem:[#allocation5 + $0x58] sm:$0xff]  ;;  %v761_v21 = vld [vmem:[#allocation5 + $0x1d0] sm:$0xff]  ;;  %p654_p13 = por %p653_p12, %p652_p11 }
  0x23   :  { %495 = vmatprep.subr.mxu1 %v727_v9  ;;  %v743_v15 = vld [vmem:[#allocation5 + $0x160] sm:$0xff]  ;;  %461 = vmatpush3.msra.mxu0 %v729_v10  ;;  %v755_v19 = vld [vmem:[#allocation5 + $0x158] sm:$0xff]  ;;  %v765_v22 = vld [vmem:[#allocation5 + $0x50] sm:$0xff] }
  0x24   :  { %496 = vmatpush3.msra.mxu1 %v731_v11  ;;  %462 = vmatprep.subr.mxu0 %v735_v12  ;;  %v767_v23 = vld [vmem:[#allocation5 + $0x150] sm:$0xff]  ;;  %v771_v24 = vld [vmem:[#allocation5 + $0xc8] sm:$0xff]  ;;  %v783_v28 = vld [vmem:[#allocation5 + $0xc0] sm:$0xff]  ;;  %p655_p0 = pnand %p654_p13, %p648_p10 }
  0x25   :  { %497 = vmatprep.subr.mxu1 %v737_v13  ;;  %463 = vmatpush3.msra.mxu0 %v741_v14  ;;  %v773_v25 = vld [vmem:[#allocation5 + $0x1c8] sm:$0xff]  ;;  %v785_v29 = vld [vmem:[#allocation5 + $0x1c0] sm:$0xff]  ;;  %v795_v35 = vld [vmem:[#allocation5 + $0xb8] sm:$0xff] }
  0x26   :  { %498 = vmatpush3.msra.mxu1 %v743_v15  ;;  %464 = vmatprep.subr.mxu0 %v747_v16  ;;  %v777_v26 = vld [vmem:[#allocation5 + $0x48] sm:$0xff]  ;;  %v789_v33 = vld [vmem:[#allocation5 + $0x40] sm:$0xff]  ;;  %v797_v36 = vld [vmem:[#allocation5 + $0x1b8] sm:$0xff] }
  0x27   :  { %499 = vmatprep.subr.mxu1 %v749_v17  ;;  %465 = vmatpush3.msra.mxu0 %v753_v18  ;;  %v779_v27 = vld [vmem:[#allocation5 + $0x148] sm:$0xff]  ;;  %v791_v34 = vld [vmem:[#allocation5 + $0x140] sm:$0xff]  ;;  %v801_v37 = vld [vmem:[#allocation5 + $0x38] sm:$0xff] }
  0x28   :  { %500 = vmatpush3.msra.mxu1 %v755_v19  ;;  %466 = vmatprep.subr.mxu0 %v759_v20  ;;  %v803_v38 = vld [vmem:[#allocation5 + $0x138] sm:$0xff]  ;;  %v807_v39 = vld [vmem:[#allocation5 + $0xb0] sm:$0xff]  ;;  %v819_v45 = vld [vmem:[#allocation5 + $0xa8] sm:$0xff] }
  0x29   :  { %501 = vmatprep.subr.mxu1 %v761_v21  ;;  %467 = vmatpush3.msra.mxu0 %v765_v22  ;;  %v809_v40 = vld [vmem:[#allocation5 + $0x1b0] sm:$0xff]  ;;  %v821_v46 = vld [vmem:[#allocation5 + $0x1a8] sm:$0xff]  ;;  %v831_v49 = vld [vmem:[#allocation5 + $0xa0] sm:$0xff] }
  0x2a   :  { %502 = vmatpush3.msra.mxu1 %v767_v23  ;;  %468 = vmatprep.subr.mxu0 %v771_v24  ;;  %v813_v43 = vld [vmem:[#allocation5 + $0x30] sm:$0xff]  ;;  %v825_v47 = vld [vmem:[#allocation5 + $0x28] sm:$0xff]  ;;  %v833_v50 = vld [vmem:[#allocation5 + $0x1a0] sm:$0xff] }
  0x2b   :  { %503 = vmatprep.subr.mxu1 %v773_v25  ;;  %469 = vmatpush3.msra.mxu0 %v777_v26  ;;  %v815_v44 = vld [vmem:[#allocation5 + $0x130] sm:$0xff]  ;;  %v827_v48 = vld [vmem:[#allocation5 + $0x128] sm:$0xff]  ;;  %v839_v52 = vld [vmem:[#allocation5 + $0x20] sm:$0xff] }
  0x2c   :  { %504 = vmatpush3.msra.mxu1 %v779_v27  ;;  %470 = vmatprep.subr.mxu0 %v783_v28  ;;  %v841_v53 = vld [vmem:[#allocation5 + $0x120] sm:$0xff]  ;;  %v108_v54 = vld [vmem:[#allocation2] sm:$0xff]  ;;  %v845_v55 = vld [vmem:[#allocation5 + $0x98] sm:$0xff] }
  0x2d   :  { %505 = vmatprep.subr.mxu1 %v785_v29  ;;  %471 = vmatpush3.msra.mxu0 %v789_v33  ;;  %v847_v56 = vld [vmem:[#allocation5 + $0x198] sm:$0xff]  ;;  %v110_v57 = vcombine.high %v108_v54, %v108_v54  ;;  %v857_v60 = vld [vmem:[#allocation5 + $0x90] sm:$0xff]  ;;  %v117_v62 = vrot.slane %v108_v54, %v835_v51  ;;  %v871_v32 = vld [vmem:[#allocation5 + $0x88] sm:$0xff] }
  0x2e   :  { %506 = vmatpush3.msra.mxu1 %v791_v34  ;;  %472 = vmatprep.subr.mxu0 %v795_v35  ;;  %976 = vst [vmem:[#allocation11_spill] sm:$0xff] %v847_v56  ;;  %v851_v58 = vld [vmem:[#allocation5 + $0x18] sm:$0xff]  ;;  %979 = vst [vmem:[#allocation14_spill] sm:$0xff] %v857_v60  ;;  %v859_v61 = vld [vmem:[#allocation5 + $0x190] sm:$0xff] }
  0x2f   :  { %507 = vmatprep.subr.mxu1 %v797_v36  ;;  %473 = vmatpush3.msra.mxu0 %v801_v37  ;;  %977 = vst [vmem:[#allocation12_spill] sm:$0xff] %v851_v58  ;;  %v853_v59 = vld [vmem:[#allocation5 + $0x118] sm:$0xff]  ;;  %980 = vst [vmem:[#allocation15_spill] sm:$0xff] %v859_v61  ;;  %v864_v63 = vld [vmem:[#allocation5 + $0x10] sm:$0xff]  ;;  %v124_v31 = vrot.slane %v110_v57, %v835_v51 }
  0x30   :  { %508 = vmatpush3.msra.mxu1 %v803_v38  ;;  %474 = vmatprep.subr.mxu0 %v807_v39  ;;  %978 = vst [vmem:[#allocation13_spill] sm:$0xff] %v853_v59  ;;  %v866_v30 = vld [vmem:[#allocation5 + $0x110] sm:$0xff]  ;;  %v873_v41 = vld [vmem:[#allocation5 + $0x188] sm:$0xff]  ;;  %v883_v57 = vld [vmem:[#allocation5 + $0x80] sm:$0xff] }
  0x31   :  { %509 = vmatprep.subr.mxu1 %v809_v40  ;;  %475 = vmatpush3.msra.mxu0 %v813_v43  ;;  %v877_v42 = vld [vmem:[#allocation5 + $0x8] sm:$0xff] }
  0x32   :  { %510 = vmatpush3.msra.mxu1 %v815_v44  ;;  %476 = vmatprep.subr.mxu0 %v819_v45  ;;  %v879_v54 = vld [vmem:[#allocation5 + $0x108] sm:$0xff] }
  0x33   :  { %511 = vmatprep.subr.mxu1 %v821_v46  ;;  %477 = vmatpush3.msra.mxu0 %v825_v47 }
  0x34   :  { %512 = vmatpush3.msra.mxu1 %v827_v48  ;;  %478 = vmatprep.subr.mxu0 %v831_v49 }
  0x35   :  { %513 = vmatprep.subr.mxu1 %v833_v50  ;;  %479 = vmatpush3.msra.mxu0 %v839_v52 }
  0x36   :  { %514 = vmatpush3.msra.mxu1 %v841_v53  ;;  %480 = vmatprep.subr.mxu0 %v845_v55 }
  0x37   :  { %515 = vmatprep.subr.mxu1 %v847_v56  ;;  %481 = vmatpush3.msra.mxu0 %v851_v58  ;;  %v885_v58 = vld [vmem:[#allocation5 + $0x180] sm:$0xff] }
  0x38   :  { %516 = vmatpush3.msra.mxu1 %v853_v59  ;;  %482 = vmatprep.subr.mxu0 %v857_v60  ;;  %v125_v59 = vcombine.high %v117_v62, %v117_v62  ;;  %v889_v60 = vld [vmem:[#allocation5] sm:$0xff] }
  0x39   :  { %517 = vmatprep.subr.mxu1 %v859_v61  ;;  %483 = vmatpush3.msra.mxu0 %v864_v63  ;;  %v126_v61 = vcombine.high %v124_v31, %v124_v31  ;;  %v893_v56 = vld [vmem:[#allocation5 + $0x100] sm:$0xff] }
  0x3a   :  { %518 = vmatpush3.msra.mxu1 %v866_v30  ;;  %484 = vmatprep.subr.mxu0 %v871_v32 }
  0x3b   :  { %519 = vmatprep.subr.mxu1 %v873_v41  ;;  %485 = vmatpush3.msra.mxu0 %v877_v42 }
  0x3c   :  { %520 = vmatpush3.msra.mxu1 %v879_v54  ;;  %486 = vmatprep.subr.mxu0 %v883_v57 }
  0x3d   :  { %521 = vmatprep.subr.mxu1 %v885_v58  ;;  %487 = vmatpush3.msra.mxu0 %v889_v60 }
  0x3e   :  { %195 = vmatprep.mubr.f32.mxu0 %v125_v59  ;;  %522 = vmatpush3.msra.mxu1 %v893_v56 }
  0x3f   :  { %265 = vmatprep.mubr.f32.mxu1 %v126_v61  ;;  %196 = vmatmul.mubr.f32.vlgmr.msra.gmra.mxu0 %v117_v62 }
  0x40   :  { %266 = vmatmul.mubr.f32.vlgmr.msra.gmra.mxu1 %v124_v31  ;;  %526 = vmatprep.subr.mxu0 %v703_v0  ;;  %v273_v0 = vld [vmem:[#allocation2 + $0x8] sm:$0xff] }
  0x41   :  { %561 = vmatprep.subr.mxu1 %v705_v1  ;;  %527 = vmatpush3.msra.mxu0 %v707_v2  ;;  %v275_v1 = vcombine.high %v273_v0, %v273_v0  ;;  %v282_v2 = vrot.slane %v273_v0, %v835_v51 }
  0x42   :  { %562 = vmatpush3.msra.mxu1 %v711_v3  ;;  %528 = vmatprep.subr.mxu0 %v713_v4  ;;  %v981_v3 = vld [vmem:[#allocation11_spill] sm:$0xff] }
  0x43   :  { %563 = vmatprep.subr.mxu1 %v715_v5  ;;  %529 = vmatpush3.msra.mxu0 %v719_v6  ;;  %v289_v4 = vrot.slane %v275_v1, %v835_v51  ;;  %v982_v5 = vld [vmem:[#allocation12_spill] sm:$0xff]  ;;  %v983_v6 = vld [vmem:[#allocation13_spill] sm:$0xff] }
  0x44   :  { %564 = vmatpush3.msra.mxu1 %v721_v7  ;;  %530 = vmatprep.subr.mxu0 %v723_v8  ;;  %v984_v7 = vld [vmem:[#allocation14_spill] sm:$0xff]  ;;  %v985_v8 = vld [vmem:[#allocation15_spill] sm:$0xff] }
  0x45   :  { %565 = vmatprep.subr.mxu1 %v727_v9  ;;  %531 = vmatpush3.msra.mxu0 %v729_v10  ;;  %v290_v9 = vcombine.high %v282_v2, %v282_v2  ;;  %v291_v10 = vcombine.high %v289_v4, %v289_v4 }
  0x46   :  { %566 = vmatpush3.msra.mxu1 %v731_v11  ;;  %532 = vmatprep.subr.mxu0 %v735_v12  ;;  %v678_v11 = vmov 0.0  }
  0x47   :  { %567 = vmatprep.subr.mxu1 %v737_v13  ;;  %533 = vmatpush3.msra.mxu0 %v741_v14  ;;  %40 = vst [vmem:[#allocation7] sm:$0x1] %v678_v11  ;;  %41 = vst [vmem:[#allocation7 + $0x4] sm:$0x1] %v678_v11 }
  0x48   :  { %568 = vmatpush3.msra.mxu1 %v743_v15  ;;  %534 = vmatprep.subr.mxu0 %v747_v16  ;;  %42 = vst [vmem:[#allocation7 + $0x3] sm:$0x1] %v678_v11  ;;  %43 = vst [vmem:[#allocation7 + $0x7] sm:$0x1] %v678_v11 }
  0x49   :  { %569 = vmatprep.subr.mxu1 %v749_v17  ;;  %535 = vmatpush3.msra.mxu0 %v753_v18 }
  0x4a   :  { %570 = vmatpush3.msra.mxu1 %v755_v19  ;;  %536 = vmatprep.subr.mxu0 %v759_v20 }
  0x4b   :  { %571 = vmatprep.subr.mxu1 %v761_v21  ;;  %537 = vmatpush3.msra.mxu0 %v765_v22 }
  0x4c   :  { %572 = vmatpush3.msra.mxu1 %v767_v23  ;;  %538 = vmatprep.subr.mxu0 %v771_v24 }
  0x4d   :  { %573 = vmatprep.subr.mxu1 %v773_v25  ;;  %539 = vmatpush3.msra.mxu0 %v777_v26 }
  0x4e   :  { %574 = vmatpush3.msra.mxu1 %v779_v27  ;;  %540 = vmatprep.subr.mxu0 %v783_v28 }
  0x4f   :  { %575 = vmatprep.subr.mxu1 %v785_v29  ;;  %541 = vmatpush3.msra.mxu0 %v789_v33 }
  0x50   :  { %576 = vmatpush3.msra.mxu1 %v791_v34  ;;  %542 = vmatprep.subr.mxu0 %v795_v35 }
  0x51   :  { %577 = vmatprep.subr.mxu1 %v797_v36  ;;  %543 = vmatpush3.msra.mxu0 %v801_v37 }
  0x52   :  { %578 = vmatpush3.msra.mxu1 %v803_v38  ;;  %544 = vmatprep.subr.mxu0 %v807_v39 }
  0x53   :  { %579 = vmatprep.subr.mxu1 %v809_v40  ;;  %545 = vmatpush3.msra.mxu0 %v813_v43 }
  0x54   :  { %580 = vmatpush3.msra.mxu1 %v815_v44  ;;  %546 = vmatprep.subr.mxu0 %v819_v45 }
  0x55   :  { %581 = vmatprep.subr.mxu1 %v821_v46  ;;  %547 = vmatpush3.msra.mxu0 %v825_v47 }
  0x56   :  { %582 = vmatpush3.msra.mxu1 %v827_v48  ;;  %548 = vmatprep.subr.mxu0 %v831_v49 }
  0x57   :  { %583 = vmatprep.subr.mxu1 %v833_v50  ;;  %549 = vmatpush3.msra.mxu0 %v839_v52 }
  0x58   :  { %584 = vmatpush3.msra.mxu1 %v841_v53  ;;  %550 = vmatprep.subr.mxu0 %v845_v55 }
  0x59   :  { %585 = vmatprep.subr.mxu1 %v981_v3  ;;  %551 = vmatpush3.msra.mxu0 %v982_v5 }
  0x5a   :  { %586 = vmatpush3.msra.mxu1 %v983_v6  ;;  %552 = vmatprep.subr.mxu0 %v984_v7 }
  0x5b   :  { %587 = vmatprep.subr.mxu1 %v985_v8  ;;  %553 = vmatpush3.msra.mxu0 %v864_v63 }
  0x5c   :  { %588 = vmatpush3.msra.mxu1 %v866_v30  ;;  %554 = vmatprep.subr.mxu0 %v871_v32 }
  0x5d   :  { %589 = vmatprep.subr.mxu1 %v873_v41  ;;  %555 = vmatpush3.msra.mxu0 %v877_v42 }
  0x5e   :  { %590 = vmatpush3.msra.mxu1 %v879_v54  ;;  %556 = vmatprep.subr.mxu0 %v883_v57 }
  0x5f   :  { %591 = vmatprep.subr.mxu1 %v885_v58  ;;  %557 = vmatpush3.msra.mxu0 %v889_v60 }
  0x60   :  { %360 = vmatprep.mubr.f32.mxu0 %v290_v9  ;;  %592 = vmatpush3.msra.mxu1 %v893_v56 }
  0x61   :  { %430 = vmatprep.mubr.f32.mxu1 %v291_v10  ;;  %361 = vmatmul.mubr.f32.vlgmr.msra.gmra.mxu0 %v282_v2 }
  0x62   :  { %431 = vmatmul.mubr.f32.vlgmr.msra.gmra.mxu1 %v289_v4 }
  0xff   :  { %v488_v12 = vpop.f32.mrf.mxu0 }
 0x100   :  { %v523_v13 = vpop.f32.mrf.mxu1 }
 0x101   :  { %v489_v14 = vpop.f32.mrf.mxu0 }
 0x102   :  { %v524_v15 = vpop.f32.mrf.mxu1  ;;  %v490_v16 = vadd.f32 %v489_v14, %v488_v12 }
 0x103   :  { %v525_v17 = vadd.f32 %v524_v15, %v523_v13 }
 0x105   :  { %v268_v18 = vadd.f32 %v525_v17, %v490_v16 }
 0x107   :  { %271 = vst [vmem:[#allocation7 + $0x1] sm:$0x3] %v268_v18 }
 0x121   :  { %v558_v19 = vpop.f32.mrf.mxu0 }
 0x122   :  { %v593_v20 = vpop.f32.mrf.mxu1 }
 0x123   :  { %v559_v21 = vpop.f32.mrf.mxu0 }
 0x124   :  { %v594_v22 = vpop.f32.mrf.mxu1  ;;  %v560_v23 = vadd.f32 %v559_v21, %v558_v19 }
 0x125   :  { %v595_v24 = vadd.f32 %v594_v22, %v593_v20 }
 0x127   :  { %v433_v25 = vadd.f32 %v595_v24, %v560_v23 }
 0x129   :  { %437 = vst [vmem:[#allocation7 + $0x5] sm:$0x3] %v433_v25 }
 0x12a   :  { %658 = shalt.err (!%p655_p0)
}
 0x12b   :  { %s680_s22 = smov 64   ;;  %s681_s23 = smov 4  }
 0x12c   :  { %449 = dma.vmem_to_hbm [thread:$0]  %s444_s1, 128, %s970_s2, [#allocation4], %s680_s22, %s680_s22, %s681_s23  }
 0x12d   :  { %671 = dma.done.wait [#allocation4], 128  }
 0x12e   :  { %672 = vsyncadd [#allocation4], 4294967168 }
 0x12f   :  { %453 = vsyncpa [#allocation3], 1 }
 0x130   :  { %454 = vsyncpa [#allocation6], 1 }
 0x131   :  { %455 = vsyncpa [#allocation4], 1 }

</bundles_post_ra>
